<compile_context>
chip_gen: v6e
topology: v6e:2x2x1
jax: 0.10.0
libtpu: 0.0.40
codegen_flags: <defaults>
</compile_context>

<pallas_src>
import functools

import jax
import jax.numpy as jnp
from jax import lax
from jax.experimental import pallas as pl
from jax.experimental.pallas import tpu as pltpu


def _round_up(x: int, m: int) -> int:
    return ((x + m - 1) // m) * m


def _vmem_capacity_bytes() -> int:
    """Physical VMEM of the local TPU; conservative (v7x-sized) fallback."""
    try:
        return int(pltpu.get_tpu_info().vmem_capacity_bytes)
    except Exception:
        return 64 << 20


# ---------------------------------------------------------------------------
# Kernels
# ---------------------------------------------------------------------------
def _linear_kernel_acc(x_ref, w_ref, b_ref, o_ref, acc_ref, *, compute_dtype):
    """General path: f32 VMEM accumulator, cast to out dtype in the epilogue."""
    k = pl.program_id(2)

    @pl.when(k == 0)
    def _():
        acc_ref[...] = jnp.zeros_like(acc_ref)

    x = x_ref[...]
    w = w_ref[...]
    if compute_dtype is not None:
        x = x.astype(compute_dtype)
        w = w.astype(compute_dtype)

    # x (tm, tk) contracted with weight (tn, tk) on the shared K axis -> (tm, tn).
    acc_ref[...] += lax.dot_general(
        x, w,
        dimension_numbers=(((1,), (1,)), ((), ())),
        preferred_element_type=jnp.float32,
    )

    @pl.when(k == pl.num_programs(2) - 1)
    def _():
        o_ref[...] = (acc_ref[...] + b_ref[...].astype(jnp.float32)).astype(o_ref.dtype)


def _linear_kernel_f32out(x_ref, w_ref, b_ref, o_ref, *, compute_dtype):
    """f32-output fast path: accumulate directly into the resident output tile."""
    k = pl.program_id(2)

    @pl.when(k == 0)
    def _():
        o_ref[...] = jnp.zeros_like(o_ref)

    x = x_ref[...]
    w = w_ref[...]
    if compute_dtype is not None:
        x = x.astype(compute_dtype)
        w = w.astype(compute_dtype)

    o_ref[...] += lax.dot_general(
        x, w,
        dimension_numbers=(((1,), (1,)), ((), ())),
        preferred_element_type=jnp.float32,
    )

    @pl.when(k == pl.num_programs(2) - 1)
    def _():
        o_ref[...] += b_ref[...].astype(jnp.float32)


# ---------------------------------------------------------------------------
# Tiling heuristics
# ---------------------------------------------------------------------------
def _pick_tiles(B: int, D: int, C: int, x_itemsize: int, vmem_cap: int):
    # v5e/v6e have 128 MiB physical VMEM; v7x only 64 MiB -> cap tm/tn at 512 there.
    big_vmem = vmem_cap >= (96 << 20)
    cap_mn = 1024 if big_vmem else 512
    cap_k = 1024

    # Sub-32-bit dtypes pack rows along sublanes: 8 rows (f32), 16 (bf16), 32 (8-bit).
    sub = max(8, 32 // max(1, x_itemsize))

    tm = min(cap_mn, _round_up(max(B, 1), sub))
    tn = min(cap_mn, _round_up(max(C, 1), 128))
    tk = min(cap_k, _round_up(max(D, 1), 128))

    # Megacore: if the whole batch fits in one M tile, make sure the parallel N
    # axis has >= 2 blocks (keeps both v7x TensorCores busy; harmless elsewhere).
    if _round_up(B, tm) == tm and C >= 256 and _round_up(C, tn) // tn < 2:
        tn = max(128, min(tn, _round_up(pl.cdiv(C, 2), 128)))

    return tm, tn, tk


def _vmem_limit_bytes(tm, tn, tk, x_it, w_it, out_it, use_acc, vmem_cap) -> int:
    # Double-buffered inputs + double-buffered output (+ optional acc scratch).
    est = 2 * (tm * tk * x_it + tn * tk * w_it + tn * 4) + 2 * tm * tn * out_it
    if use_acc:
        est += tm * tn * 4
    limit = max(32 << 20, 2 * est)
    return int(min(limit, vmem_cap // 2))


# ---------------------------------------------------------------------------
# Wrapper
# ---------------------------------------------------------------------------
def simple_linear(x, weight, bias, *, compute_dtype=None):
    """y = x @ weight.T + bias  (torch.nn.Linear forward).

    x:      (B, D)
    weight: (C, D)   -- PyTorch convention, NOT transposed in the wrapper
    bias:   (C,)
    compute_dtype: optional dtype (e.g. jnp.bfloat16) for the MXU operands;
                   accumulation stays f32. None = use the input dtype (exact
                   nn.Linear semantics).
    returns (B, C)
    """
    B, D = x.shape
    C, D2 = weight.shape
    assert D == D2, "input_dim mismatch"
    out_dtype = x.dtype

    x_it = jnp.dtype(x.dtype).itemsize
    w_it = jnp.dtype(weight.dtype).itemsize
    b_it = jnp.dtype(bias.dtype).itemsize
    out_it = jnp.dtype(out_dtype).itemsize

    vmem_cap = _vmem_capacity_bytes()
    tm, tn, tk = _pick_tiles(B, D, C, x_it, vmem_cap)
    Bp, Cp, Dp = _round_up(B, tm), _round_up(C, tn), _round_up(D, tk)

    # Zero-pad to tile multiples (pad-K contributes 0 to the accumulation; pad
    # rows/cols are sliced off below). Only pads when actually needed.
    if (Bp, Dp) != (B, D):
        x = jnp.pad(x, ((0, Bp - B), (0, Dp - D)))
    if (Cp, Dp) != (C, D):
        weight = jnp.pad(weight, ((0, Cp - C), (0, Dp - D)))
    if Cp != C:
        bias = jnp.pad(bias, (0, Cp - C))
    b2d = bias.reshape(1, Cp)

    grid = (Bp // tm, Cp // tn, Dp // tk)
    gm, gn, _ = grid

    # f32 fast path: accumulate straight into the resident output tile.
    f32_fast_path = out_dtype == jnp.float32
    if f32_fast_path:
        kernel = functools.partial(_linear_kernel_f32out, compute_dtype=compute_dtype)
        scratch_shapes = []
    else:
        kernel = functools.partial(_linear_kernel_acc, compute_dtype=compute_dtype)
        scratch_shapes = [pltpu.VMEM((tm, tn), jnp.float32)]

    # Accurate-ish HBM traffic hint: x is re-read once per N block, weight once
    # per M block, bias once per M block, output written once.
    cost = pl.CostEstimate(
        flops=2 * Bp * Dp * Cp,
        transcendentals=0,
        bytes_accessed=int(
            gn * Bp * Dp * x_it + gm * Cp * Dp * w_it + gm * Cp * b_it + Bp * Cp * out_it
        ),
    )

    vmem_limit = _vmem_limit_bytes(
        tm, tn, tk, x_it, w_it, out_it, not f32_fast_path, vmem_cap
    )

    out_padded = pl.pallas_call(
        kernel,
        out_shape=jax.ShapeDtypeStruct((Bp, Cp), out_dtype),
        grid_spec=pltpu.PrefetchScalarGridSpec(
            num_scalar_prefetch=0,
            grid=grid,
            in_specs=[
                pl.BlockSpec((tm, tk), lambda i, j, k: (i, k)),   # x tile
                pl.BlockSpec((tn, tk), lambda i, j, k: (j, k)),   # weight tile, (C, D) layout
                pl.BlockSpec((1, tn), lambda i, j, k: (0, j)),    # bias tile
            ],
            out_specs=pl.BlockSpec((tm, tn), lambda i, j, k: (i, j)),
            scratch_shapes=scratch_shapes,
        ),
        compiler_params=pltpu.CompilerParams(
            dimension_semantics=("parallel", "parallel", "arbitrary"),
            vmem_limit_bytes=vmem_limit,
        ),
        cost_estimate=cost,
    )(x, weight, b2d)

    if (Bp, Cp) != (B, C):
        out_padded = out_padded[:B, :C]
    return out_padded


if __name__ == "__main__":
    # Small shapes consistent with the module: batch=8, input_dim=32, num_classes=16.
    # (At these sizes the op is launch-overhead-bound; the tiling targets real shapes.)
    B, D, C = 8, 32, 16

    key = jax.random.PRNGKey(0)
    kx, kw, kb = jax.random.split(key, 3)

    # Deterministic parameter init (shapes per nn.Linear(input_dim, num_classes)).
    bound = 1.0 / (D ** 0.5)
    weight = jax.random.uniform(kw, (C, D), jnp.float32, -bound, bound)
    bias = jax.random.uniform(kb, (C,), jnp.float32, -bound, bound)
    x = jax.random.normal(kx, (B, D), jnp.float32)

    out = simple_linear(x, weight, bias)
    out = jax.block_until_ready(out)

    # Reference check against plain JAX.
    ref = x @ weight.T + bias
    assert out.shape == (B, C)
    assert jnp.allclose(out, ref, atol=1e-5, rtol=1e-5)

    print("KERNEL_OK")
</pallas_src>

<mosaic_0001>
module attributes {stable_mosaic.version = 11 : i64} {
  func.func @_linear_kernel_f32out(%arg0: i32, %arg1: i32, %arg2: i32, %arg3: memref<8x128xf32, #tpu.memory_space<vmem>>, %arg4: memref<128x128xf32, #tpu.memory_space<vmem>>, %arg5: memref<1x128xf32, #tpu.memory_space<vmem>>, %arg6: memref<8x128xf32, #tpu.memory_space<vmem>>) attributes {dimension_semantics = [#tpu.dimension_semantics<parallel>, #tpu.dimension_semantics<parallel>, #tpu.dimension_semantics<arbitrary>], iteration_bounds = array<i64: 1, 1, 1>, scalar_prefetch = 0 : i64, scratch_operands = 0 : i64, tpu.core_type = #tpu.core_type<tc>, window_params = [{transform_indices = @transform_0, window_bounds = array<i64: 8, 128>}, {transform_indices = @transform_1, window_bounds = array<i64: 128, 128>}, {transform_indices = @transform_2, window_bounds = array<i64: 1, 128>}, {transform_indices = @transform_3, window_bounds = array<i64: 8, 128>}]} {
    %c0_i32 = arith.constant 0 : i32
    %0 = arith.cmpi eq, %arg2, %c0_i32 : i32
    %1 = arith.extui %0 : i1 to i32
    %c0_i32_0 = arith.constant 0 : i32
    %2 = arith.cmpi ne, %1, %c0_i32_0 : i32
    scf.if %2 {
      %cst_10 = arith.constant 0.000000e+00 : f32
      %12 = vector.broadcast %cst_10 : f32 to vector<8x128xf32>
      %c0_11 = arith.constant 0 : index
      %c0_12 = arith.constant 0 : index
      %13 = vector.load %arg6[%c0_11, %c0_12] : memref<8x128xf32, #tpu.memory_space<vmem>>, vector<8x128xf32>
      tpu.vector_store %arg6[%c0_11, %c0_12], %12 {strides = array<i32>} : memref<8x128xf32, #tpu.memory_space<vmem>>, vector<8x128xf32>,
    } else {
    }
    %c0 = arith.constant 0 : index
    %c0_1 = arith.constant 0 : index
    %3 = vector.load %arg3[%c0, %c0_1] : memref<8x128xf32, #tpu.memory_space<vmem>>, vector<8x128xf32>
    %c0_2 = arith.constant 0 : index
    %c0_3 = arith.constant 0 : index
    %4 = vector.load %arg4[%c0_2, %c0_3] : memref<128x128xf32, #tpu.memory_space<vmem>>, vector<128x128xf32>
    %c0_4 = arith.constant 0 : index
    %c0_5 = arith.constant 0 : index
    %5 = vector.load %arg6[%c0_4, %c0_5] : memref<8x128xf32, #tpu.memory_space<vmem>>, vector<8x128xf32>
    %cst = arith.constant dense<0.000000e+00> : vector<8x128xf32>
    %6 = tpu.matmul %3, %4, %cst {dimension_numbers = #tpu.dot_dimension_numbers<[1], [1], [0], [0], [0, 0, 1, 0], [], []>} : vector<8x128xf32>, vector<128x128xf32>, vector<8x128xf32> -> vector<8x128xf32>
    %7 = arith.addf %5, %6 : vector<8x128xf32>
    %c0_6 = arith.constant 0 : index
    %c0_7 = arith.constant 0 : index
    %8 = vector.load %arg6[%c0_6, %c0_7] : memref<8x128xf32, #tpu.memory_space<vmem>>, vector<8x128xf32>
    tpu.vector_store %arg6[%c0_6, %c0_7], %7 {strides = array<i32>} : memref<8x128xf32, #tpu.memory_space<vmem>>, vector<8x128xf32>,
    %c0_i32_8 = arith.constant 0 : i32
    %9 = arith.cmpi eq, %arg2, %c0_i32_8 : i32
    %10 = arith.extui %9 : i1 to i32
    %c0_i32_9 = arith.constant 0 : i32
    %11 = arith.cmpi ne, %10, %c0_i32_9 : i32
    scf.if %11 {
      %c0_10 = arith.constant 0 : index
      %c0_11 = arith.constant 0 : index
      %12 = vector.load %arg6[%c0_10, %c0_11] : memref<8x128xf32, #tpu.memory_space<vmem>>, vector<8x128xf32>
      %c0_12 = arith.constant 0 : index
      %c0_13 = arith.constant 0 : index
      %13 = vector.load %arg5[%c0_12, %c0_13] : memref<1x128xf32, #tpu.memory_space<vmem>>, vector<1x128xf32>
      %14 = vector.broadcast %13 : vector<1x128xf32> to vector<8x128xf32>
      %15 = arith.addf %12, %14 : vector<8x128xf32>
      %c0_14 = arith.constant 0 : index
      %c0_15 = arith.constant 0 : index
      %16 = vector.load %arg6[%c0_14, %c0_15] : memref<8x128xf32, #tpu.memory_space<vmem>>, vector<8x128xf32>
      tpu.vector_store %arg6[%c0_14, %c0_15], %15 {strides = array<i32>} : memref<8x128xf32, #tpu.memory_space<vmem>>, vector<8x128xf32>,
    } else {
    }
    return
  }
  func.func @transform_0(%arg0: i32, %arg1: i32, %arg2: i32) -> (i32, i32) {
    %c0_i32 = arith.constant 0 : i32
    return %arg0, %arg2 : i32, i32
  }
  func.func @transform_1(%arg0: i32, %arg1: i32, %arg2: i32) -> (i32, i32) {
    %c0_i32 = arith.constant 0 : i32
    return %arg1, %arg2 : i32, i32
  }
  func.func @transform_2(%arg0: i32, %arg1: i32, %arg2: i32) -> (i32, i32) {
    %c0_i32 = arith.constant 0 : i32
    %c0_i32_0 = arith.constant 0 : i32
    return %c0_i32, %arg1 : i32, i32
  }
  func.func @transform_3(%arg0: i32, %arg1: i32, %arg2: i32) -> (i32, i32) {
    %c0_i32 = arith.constant 0 : i32
    return %arg0, %arg1 : i32, i32
  }
}

</mosaic_0001>

<bundles_post_ra>
// kernel: tpu_custom_call.1
= control target key start
LH: loop header
LB: loop body
LE: loop exit
PB: predicated region body
PF: predicated region fallthrough
CT: control target
= control target key end

     0   :  { %8 = vsyncpa [#allocation3], 0  ;;  %s330_s0 = inlined_call_operand.hbm [shape: f32[8,128], index: 0, kind: input, shape index: {}]   ;;  %s331_s1 = inlined_call_operand.hbm [shape: f32[128,128], index: 1, kind: input, shape index: {}]   ;;  %s332_s2 = inlined_call_operand.vmem [shape: f32[1,128], index: 2, kind: input, shape index: {}]   ;;  %s333_s3 = inlined_call_operand.hbm [shape: f32[8,128], index: 3, kind: output, shape index: {}]  }
   0x1   :  { %9 = vsyncpa [#allocation6], 0 }
   0x2   :  { %10 = vsyncpa [#allocation4], 0  ;;  %s291_s12 = smov [#allocation2]   ;;  %s292_s14 = smov [#allocation5]  }
   0x3   :  { %s17_s13 = sshll.u32 %s291_s12, 4  ;;  %s26_s15 = sshll.u32 %s292_s14, 4  ;;  %s18_s13 = int_to_ptr.vmem [resolvable:$true] %s17_s13  ;;  %s27_s15 = int_to_ptr.vmem [resolvable:$true] %s26_s15 }
   0x4   :  { %s233_s16 = scalar_lea.vmem %s18_s13, 128  ;;  %p238_p1 = scmp.lt.s32.totalorder %s18_s13, %s18_s13 }
   0x5   :  { %p234_p0 = scmp.ne.s32.totalorder %s18_s13, %s233_s16  ;;  %p239_p2 = scmp.lt.s32.totalorder %s233_s16, %s233_s16 }
   0x7   :  { %p240_p3 = por %p239_p2, %p238_p1 }
   0x9   :  { %p241_p4 = pnand %p240_p3, %p234_p0 }
   0xb   :  { %244 = shalt.err (!%p241_p4)
}
   0xc   :  { %20 = dma.hbm_to_vmem [thread:$0]  %s330_s0, 128, %s18_s13, [#allocation3]  }
   0xd   :  { %s253_s19 = scalar_lea.vmem %s27_s15, 2048  ;;  %p258_p6 = scmp.lt.s32.totalorder %s27_s15, %s27_s15 }
   0xe   :  { %p254_p5 = scmp.ne.s32.totalorder %s27_s15, %s253_s19  ;;  %p259_p7 = scmp.lt.s32.totalorder %s253_s19, %s253_s19 }
  0x10   :  { %p260_p8 = por %p259_p7, %p258_p6 }
  0x12   :  { %p261_p9 = pnand %p260_p8, %p254_p5 }
  0x14   :  { %264 = shalt.err (!%p261_p9)
}
  0x15   :  { %s293_s20 = smov 128   ;;  %s294_s21 = smov 8  }
  0x16   :  { %32 = dma.hbm_to_vmem [thread:$0]  %s331_s1, 2048, %s27_s15, [#allocation6], %s293_s20, %s293_s20, %s294_s21  }
  0x17   :  { %285 = dma.done.wait [#allocation3], 128  }
  0x18   :  { %286 = vsyncadd [#allocation3], 4294967168 }
  0x19   :  { %287 = dma.done.wait [#allocation6], 2048  }
  0x1a   :  { %288 = vsyncadd [#allocation6], 4294965248  ;;  %v295_v0 = vmov 0.0   ;;  %vm296_vm0 = vmmov 0   ;;  %v62_v1 = vld [vmem:[#allocation5 + $0x78] sm:$0xff]  ;;  %v61_v2 = vld [vmem:[#allocation5 + $0x70] sm:$0xff] }
  0x1b   :  { %183 = vmatprep.subr.mxu0 %v295_v0  ;;  %215 = vmatprep.mubr.msk.f32.mxu0 %vm296_vm0, %v295_v0  ;;  %v60_v3 = vld [vmem:[#allocation5 + $0x68] sm:$0xff]  ;;  %v59_v4 = vld [vmem:[#allocation5 + $0x60] sm:$0xff]  ;;  %v58_v5 = vld [vmem:[#allocation5 + $0x58] sm:$0xff]  ;;  %s297_s24 = smov [#allocation7]  }
  0x1c   :  { %184 = vmatpush3.xpose.msra.mxu0 %v62_v1  ;;  %v57_v6 = vld [vmem:[#allocation5 + $0x50] sm:$0xff]  ;;  %v56_v7 = vld [vmem:[#allocation5 + $0x48] sm:$0xff]  ;;  %v55_v8 = vld [vmem:[#allocation5 + $0x40] sm:$0xff]  ;;  %s155_s25 = sshll.u32 %s297_s24, 4  ;;  %s156_s25 = int_to_ptr.vmem [resolvable:$true] %s155_s25 }
  0x1d   :  { %185 = vmatprep.subr.mxu0 %v295_v0  ;;  %v54_v9 = vld [vmem:[#allocation5 + $0x38] sm:$0xff]  ;;  %v53_v10 = vld [vmem:[#allocation5 + $0x30] sm:$0xff]  ;;  %v52_v11 = vld [vmem:[#allocation5 + $0x28] sm:$0xff]  ;;  %s265_s26 = scalar_lea.vmem %s156_s25, 128  ;;  %p270_p11 = scmp.lt.s32.totalorder %s156_s25, %s156_s25 }
  0x1e   :  { %v51_v12 = vld [vmem:[#allocation5 + $0x20] sm:$0xff]  ;;  %v50_v13 = vld [vmem:[#allocation5 + $0x18] sm:$0xff]  ;;  %v49_v14 = vld [vmem:[#allocation5 + $0x10] sm:$0xff]  ;;  %p266_p10 = scmp.ne.s32.totalorder %s156_s25, %s265_s26  ;;  %p271_p12 = scmp.lt.s32.totalorder %s265_s26, %s265_s26 }
  0x1f   :  { %v48_v15 = vld [vmem:[#allocation5 + $0x8] sm:$0xff]  ;;  %v47_v16 = vld [vmem:[#allocation5] sm:$0xff]  ;;  %v46_v17 = vld [vmem:[#allocation2] sm:$0xff] }
  0x20   :  { %186 = vmatpush3.xpose.msra.mxu0 %v61_v2  ;;  %v165_v19 = vld [vmem:[%s332_s2] ss:$0 sm:$0xff]  ;;  %p272_p13 = por %p271_p12, %p270_p11 }
  0x21   :  { %187 = vmatprep.subr.mxu0 %v295_v0 }
  0x22   :  { %p273_p0 = pnand %p272_p13, %p266_p10 }
  0x24   :  { %188 = vmatpush3.xpose.msra.mxu0 %v60_v3 }
  0x25   :  { %189 = vmatprep.subr.mxu0 %v295_v0 }
  0x28   :  { %190 = vmatpush3.xpose.msra.mxu0 %v59_v4 }
  0x29   :  { %191 = vmatprep.subr.mxu0 %v295_v0 }
  0x2c   :  { %192 = vmatpush3.xpose.msra.mxu0 %v58_v5 }
  0x2d   :  { %193 = vmatprep.subr.mxu0 %v295_v0 }
  0x30   :  { %194 = vmatpush3.xpose.msra.mxu0 %v57_v6 }
  0x31   :  { %195 = vmatprep.subr.mxu0 %v295_v0 }
  0x34   :  { %196 = vmatpush3.xpose.msra.mxu0 %v56_v7 }
  0x35   :  { %197 = vmatprep.subr.mxu0 %v295_v0 }
  0x38   :  { %198 = vmatpush3.xpose.msra.mxu0 %v55_v8 }
  0x39   :  { %199 = vmatprep.subr.mxu0 %v295_v0 }
  0x3c   :  { %200 = vmatpush3.xpose.msra.mxu0 %v54_v9 }
  0x3d   :  { %201 = vmatprep.subr.mxu0 %v295_v0 }
  0x40   :  { %202 = vmatpush3.xpose.msra.mxu0 %v53_v10 }
  0x41   :  { %203 = vmatprep.subr.mxu0 %v295_v0 }
  0x44   :  { %204 = vmatpush3.xpose.msra.mxu0 %v52_v11 }
  0x45   :  { %205 = vmatprep.subr.mxu0 %v295_v0 }
  0x48   :  { %206 = vmatpush3.xpose.msra.mxu0 %v51_v12 }
  0x49   :  { %207 = vmatprep.subr.mxu0 %v295_v0 }
  0x4c   :  { %208 = vmatpush3.xpose.msra.mxu0 %v50_v13 }
  0x4d   :  { %209 = vmatprep.subr.mxu0 %v295_v0 }
  0x50   :  { %210 = vmatpush3.xpose.msra.mxu0 %v49_v14 }
  0x51   :  { %211 = vmatprep.subr.mxu0 %v295_v0 }
  0x54   :  { %212 = vmatpush3.xpose.msra.mxu0 %v48_v15 }
  0x55   :  { %213 = vmatprep.subr.mxu0 %v295_v0 }
  0x58   :  { %214 = vmatpush3.xpose.msra.mxu0 %v47_v16 }
  0x5b   :  { %216 = vmatmul.mubr.f32.vlgmr.msra.gmra.mxu0 %v46_v17 }
 0x11b   :  { %v130_v18 = vpop.f32.mrf.mxu0 }
 0x11c   :  { %v147_v21 = vadd.f32 %v165_v19, %v130_v18 }
 0x11d   :  { %v217_v20 = vpop.f32.mrf.mxu0 }
 0x11e   :  { %148 = vst [vmem:[#allocation7] sm:$0xff] %v147_v21 }
 0x11f   :  { %276 = shalt.err (!%p273_p0)
}
 0x120   :  { %158 = dma.vmem_to_hbm [thread:$0]  %s156_s25, 128, %s333_s3, [#allocation4]  }
 0x121   :  { %289 = dma.done.wait [#allocation4], 128  }
 0x122   :  { %290 = vsyncadd [#allocation4], 4294967168 }
 0x123   :  { %162 = vsyncpa [#allocation3], 1 }
 0x124   :  { %163 = vsyncpa [#allocation6], 1 }
 0x125   :  { %164 = vsyncpa [#allocation4], 1 }

</bundles_post_ra>
